<compile_context>
chip_gen: v7x
topology: tpu7x:2x2x1
jax: 0.10.0
libtpu: 0.0.40
codegen_flags: <defaults>
</compile_context>

<pallas_src>
import jax
import jax.numpy as jnp
from jax import lax
from jax.experimental import pallas as pl
from jax.experimental.pallas import tpu as pltpu


def _round_up(x: int, m: int) -> int:
    return ((x + m - 1) // m) * m


# ---------------------------------------------------------------------------
# Kernels
# ---------------------------------------------------------------------------
def _distmult_kernel_resident_p(s_ref, o_ref, pidx_ref, ptab_ref, out_ref):
    # s_ref, o_ref : (tb, R)   gathered entity embeddings (streamed from HBM)
    # pidx_ref     : (tb, 1)   int32 predicate indices for this tile
    # ptab_ref     : (P_pad,R) full predicate table, VMEM-resident (constant block)
    # out_ref      : (tb, 1)   per-row scores
    tb = s_ref.shape[0]
    p_rows = ptab_ref.shape[0]

    # In-kernel predicate gather: one-hot matmul on the idle MXU.
    # bf16 hi/lo split keeps it exact to ~1e-5 rel with f32 accumulation.
    ptab = ptab_ref[...].astype(jnp.float32)                      # (P_pad, R)
    ptab_hi = ptab.astype(jnp.bfloat16)
    ptab_lo = (ptab - ptab_hi.astype(jnp.float32)).astype(jnp.bfloat16)
    onehot = (pidx_ref[...] ==
              lax.broadcasted_iota(jnp.int32, (tb, p_rows), 1))
    onehot = onehot.astype(jnp.float32).astype(jnp.bfloat16)      # (tb, P_pad)
    p = (jnp.dot(onehot, ptab_hi, preferred_element_type=jnp.float32) +
         jnp.dot(onehot, ptab_lo, preferred_element_type=jnp.float32))  # (tb, R) f32

    prod = s_ref[...].astype(jnp.float32) * p * o_ref[...].astype(jnp.float32)
    out_ref[...] = jnp.sum(prod, axis=1, keepdims=True)


def _distmult_kernel_pregathered(s_ref, p_ref, o_ref, out_ref):
    # Fallback path: all three (tb, R) operands streamed from HBM.
    prod = (s_ref[...].astype(jnp.float32) *
            p_ref[...].astype(jnp.float32) *
            o_ref[...].astype(jnp.float32))
    out_ref[...] = jnp.sum(prod, axis=1, keepdims=True)


# ---------------------------------------------------------------------------
# Wrapper
# ---------------------------------------------------------------------------
def distmult_score(emb_so, emb_p, s_idx, p_idx, o_idx,
                   *, tile_b: int = 1024, resident_p=None):
    """sum(emb_so[s] * emb_p[p] * emb_so[o], axis=1) -> (B,) float32."""
    B = s_idx.shape[0]
    num_p, R = emb_p.shape

    # Few, large, 8-aligned batch tiles; pad indices (cheap) instead of asserting.
    n_tiles = max(1, -(-B // tile_b))              # cdiv
    tb = _round_up(-(-B // n_tiles), 8)            # rows per tile
    b_pad = n_tiles * tb

    def pad_idx(idx):
        idx = idx.astype(jnp.int32)
        return jnp.pad(idx, (0, b_pad - B)) if b_pad != B else idx

    s_idx_p, p_idx_p, o_idx_p = pad_idx(s_idx), pad_idx(p_idx), pad_idx(o_idx)

    # Entity-row gathers stay in plain JAX for now (see TODO at top of file).
    s_emb = jnp.take(emb_so, s_idx_p, axis=0)      # (b_pad, R)
    o_emb = jnp.take(emb_so, o_idx_p, axis=0)      # (b_pad, R)

    grid = (n_tiles,)
    cparams = pltpu.CompilerParams(dimension_semantics=("parallel",))
    out_shape = jax.ShapeDtypeStruct((b_pad, 1), jnp.float32)
    ent_spec = pl.BlockSpec((tb, R), lambda i: (i, 0))
    out_spec = pl.BlockSpec((tb, 1), lambda i: (i, 0))

    # Keep the predicate table VMEM-resident when small (the common KB case).
    p_pad_rows = _round_up(num_p, 8)
    if resident_p is None:
        resident_p = (p_pad_rows <= 128 and
                      p_pad_rows * R * emb_p.dtype.itemsize <= (1 << 20))

    if resident_p:
        ptab = emb_p if p_pad_rows == num_p else jnp.pad(
            emb_p, ((0, p_pad_rows - num_p), (0, 0)))
        pidx_col = p_idx_p.reshape(b_pad, 1)
        out = pl.pallas_call(
            _distmult_kernel_resident_p,
            out_shape=out_shape,
            grid_spec=pltpu.PrefetchScalarGridSpec(
                num_scalar_prefetch=0,
                grid=grid,
                in_specs=[
                    ent_spec,                                   # s
                    ent_spec,                                   # o
                    pl.BlockSpec((tb, 1), lambda i: (i, 0)),    # p_idx column
                    pl.BlockSpec((p_pad_rows, R), lambda i: (0, 0)),  # resident table
                ],
                out_specs=out_spec,
            ),
            compiler_params=cparams,
        )(s_emb, o_emb, pidx_col, ptab)
    else:
        p_emb = jnp.take(emb_p, p_idx_p, axis=0)
        out = pl.pallas_call(
            _distmult_kernel_pregathered,
            out_shape=out_shape,
            grid_spec=pltpu.PrefetchScalarGridSpec(
                num_scalar_prefetch=0,
                grid=grid,
                in_specs=[ent_spec, ent_spec, ent_spec],
                out_specs=out_spec,
            ),
            compiler_params=cparams,
        )(s_emb, p_emb, o_emb)

    return out[:B, 0]


# ---------------------------------------------------------------------------
# DistMult "module": deterministic parameter init + forward (== score)
# ---------------------------------------------------------------------------
class DistMultPallas:
    def __init__(self, size, rank, key):
        # size = (num_entities, num_predicates, num_entities_again)
        k_so, k_p = jax.random.split(key)
        # torch .normal_() -> standard normal init
        self.emb_so = jax.random.normal(k_so, (size[0], rank), dtype=jnp.float32)
        self.emb_p = jax.random.normal(k_p, (size[1], rank), dtype=jnp.float32)
        self.rank = rank

    def score(self, s_idx, p_idx, o_idx, **kwargs):
        return distmult_score(self.emb_so, self.emb_p, s_idx, p_idx, o_idx, **kwargs)

    def forward(self, *args, **kwargs):
        return self.score(*args, **kwargs)

    __call__ = forward


# ---------------------------------------------------------------------------
if __name__ == "__main__":
    key = jax.random.PRNGKey(0)
    k_model, k_s, k_p, k_o, k_s2, k_p2, k_o2 = jax.random.split(key, 7)

    num_entities, num_predicates, rank = 16, 4, 128
    model = DistMultPallas((num_entities, num_predicates, num_entities),
                           rank, k_model)

    def reference(s_idx, p_idx, o_idx):
        return jnp.sum(model.emb_so[s_idx] * model.emb_p[p_idx] * model.emb_so[o_idx],
                       axis=1)

    # --- case 1: small batch, resident-p path (single tile) -------------------
    batch = 8
    s_idx = jax.random.randint(k_s, (batch,), 0, num_entities, dtype=jnp.int32)
    p_idx = jax.random.randint(k_p, (batch,), 0, num_predicates, dtype=jnp.int32)
    o_idx = jax.random.randint(k_o, (batch,), 0, num_entities, dtype=jnp.int32)

    scores = jax.block_until_ready(model(s_idx, p_idx, o_idx))
    ref = reference(s_idx, p_idx, o_idx)
    assert scores.shape == (batch,)
    assert jnp.allclose(scores, ref, rtol=1e-4, atol=1e-3)

    # --- case 2: non-multiple batch, multi-tile grid + padding ----------------
    batch2 = 300
    s2 = jax.random.randint(k_s2, (batch2,), 0, num_entities, dtype=jnp.int32)
    p2 = jax.random.randint(k_p2, (batch2,), 0, num_predicates, dtype=jnp.int32)
    o2 = jax.random.randint(k_o2, (batch2,), 0, num_entities, dtype=jnp.int32)

    scores2 = jax.block_until_ready(model(s2, p2, o2, tile_b=128))
    ref2 = reference(s2, p2, o2)
    assert scores2.shape == (batch2,)
    assert jnp.allclose(scores2, ref2, rtol=1e-4, atol=1e-3)

    # --- case 3: pre-gathered-p fallback path ---------------------------------
    scores3 = jax.block_until_ready(model(s_idx, p_idx, o_idx, resident_p=False))
    assert scores3.shape == (batch,)
    assert jnp.allclose(scores3, ref, rtol=1e-4, atol=1e-3)

    print("KERNEL_OK")
</pallas_src>

<mosaic_0001>
module attributes {stable_mosaic.version = 11 : i64} {
  func.func @_distmult_kernel_resident_p(%arg0: i32, %arg1: memref<8x128xf32, #tpu.memory_space<vmem>>, %arg2: memref<8x128xf32, #tpu.memory_space<vmem>>, %arg3: memref<8x1xi32, #tpu.memory_space<vmem>>, %arg4: memref<8x128xf32, #tpu.memory_space<vmem>>, %arg5: memref<8x1xf32, #tpu.memory_space<vmem>>) attributes {dimension_semantics = [#tpu.dimension_semantics<parallel>], iteration_bounds = array<i64: 1>, scalar_prefetch = 0 : i64, scratch_operands = 0 : i64, tpu.core_type = #tpu.core_type<tc>, window_params = [{transform_indices = @transform_0, window_bounds = array<i64: 8, 128>}, {transform_indices = @transform_1, window_bounds = array<i64: 8, 128>}, {transform_indices = @transform_2, window_bounds = array<i64: 8, 1>}, {pipeline_mode = #tpu.pipeline_mode<synchronous>, transform_indices = @transform_3, window_bounds = array<i64: 8, 128>}, {transform_indices = @transform_4, window_bounds = array<i64: 8, 1>}]} {
    %c0 = arith.constant 0 : index
    %c0_0 = arith.constant 0 : index
    %0 = vector.load %arg4[%c0, %c0_0] : memref<8x128xf32, #tpu.memory_space<vmem>>, vector<8x128xf32>
    %1 = arith.truncf %0 : vector<8x128xf32> to vector<8x128xbf16>
    %2 = arith.extf %1 : vector<8x128xbf16> to vector<8x128xf32>
    %3 = arith.subf %0, %2 : vector<8x128xf32>
    %4 = arith.truncf %3 : vector<8x128xf32> to vector<8x128xbf16>
    %c0_1 = arith.constant 0 : index
    %c0_2 = arith.constant 0 : index
    %5 = vector.load %arg3[%c0_1, %c0_2] : memref<8x1xi32, #tpu.memory_space<vmem>>, vector<8x1xi32>
    %6 = tpu.iota {dimensions = array<i32: 1>} : vector<8x8xi32>
    %7 = vector.broadcast %5 : vector<8x1xi32> to vector<8x8xi32>
    %8 = arith.cmpi eq, %7, %6 : vector<8x8xi32>
    %9 = arith.extui %8 : vector<8x8xi1> to vector<8x8xi32>
    %10 = arith.sitofp %9 : vector<8x8xi32> to vector<8x8xf32>
    %11 = arith.truncf %10 : vector<8x8xf32> to vector<8x8xbf16>
    %cst = arith.constant dense<0.000000e+00> : vector<8x128xf32>
    %12 = tpu.matmul %11, %1, %cst {dimension_numbers = #tpu.dot_dimension_numbers<[1], [0], [0], [1], [0, 0, 1, 1], [], []>} : vector<8x8xbf16>, vector<8x128xbf16>, vector<8x128xf32> -> vector<8x128xf32>
    %cst_3 = arith.constant dense<0.000000e+00> : vector<8x128xf32>
    %13 = tpu.matmul %11, %4, %cst_3 {dimension_numbers = #tpu.dot_dimension_numbers<[1], [0], [0], [1], [0, 0, 1, 1], [], []>} : vector<8x8xbf16>, vector<8x128xbf16>, vector<8x128xf32> -> vector<8x128xf32>
    %14 = arith.addf %12, %13 : vector<8x128xf32>
    %c0_4 = arith.constant 0 : index
    %c0_5 = arith.constant 0 : index
    %15 = vector.load %arg1[%c0_4, %c0_5] : memref<8x128xf32, #tpu.memory_space<vmem>>, vector<8x128xf32>
    %16 = arith.mulf %15, %14 : vector<8x128xf32>
    %c0_6 = arith.constant 0 : index
    %c0_7 = arith.constant 0 : index
    %17 = vector.load %arg2[%c0_6, %c0_7] : memref<8x128xf32, #tpu.memory_space<vmem>>, vector<8x128xf32>
    %18 = arith.mulf %16, %17 : vector<8x128xf32>
    %cst_8 = arith.constant dense<0.000000e+00> : vector<8xf32>
    %19 = vector.multi_reduction <add>, %18, %cst_8 [1] : vector<8x128xf32> to vector<8xf32>
    %20 = vector.shape_cast %19 : vector<8xf32> to vector<8x1xf32>
    %c0_9 = arith.constant 0 : index
    %c0_10 = arith.constant 0 : index
    %21 = vector.load %arg5[%c0_9, %c0_10] : memref<8x1xf32, #tpu.memory_space<vmem>>, vector<8x1xf32>
    tpu.vector_store %arg5[%c0_9, %c0_10], %20 {strides = array<i32>} : memref<8x1xf32, #tpu.memory_space<vmem>>, vector<8x1xf32>,
    return
  }
  func.func @transform_0(%arg0: i32) -> (i32, i32) {
    %c0_i32 = arith.constant 0 : i32
    %c0_i32_0 = arith.constant 0 : i32
    return %arg0, %c0_i32 : i32, i32
  }
  func.func @transform_1(%arg0: i32) -> (i32, i32) {
    %c0_i32 = arith.constant 0 : i32
    %c0_i32_0 = arith.constant 0 : i32
    return %arg0, %c0_i32 : i32, i32
  }
  func.func @transform_2(%arg0: i32) -> (i32, i32) {
    %c0_i32 = arith.constant 0 : i32
    %c0_i32_0 = arith.constant 0 : i32
    return %arg0, %c0_i32 : i32, i32
  }
  func.func @transform_3(%arg0: i32) -> (i32, i32) {
    %c0_i32 = arith.constant 0 : i32
    %c0_i32_0 = arith.constant 0 : i32
    %c0_i32_1 = arith.constant 0 : i32
    return %c0_i32, %c0_i32_0 : i32, i32
  }
  func.func @transform_4(%arg0: i32) -> (i32, i32) {
    %c0_i32 = arith.constant 0 : i32
    %c0_i32_0 = arith.constant 0 : i32
    return %arg0, %c0_i32 : i32, i32
  }
}

</mosaic_0001>

<bundles_post_ra>
// kernel: tpu_custom_call.1
= control target key start
LH: loop header
LB: loop body
LE: loop exit
PB: predicated region body
PF: predicated region fallthrough
CT: control target
= control target key end

     0   :  { %9 = vsyncpa [#allocation3], 0  ;;  %s198_s15 = smov [#allocation2]   ;;  %s251_s0 = inlined_call_operand.vmem [shape: f32[8,128], index: 0, kind: input, shape index: {}]   ;;  %s252_s1 = inlined_call_operand.hbm [shape: f32[8,128], index: 1, kind: input, shape index: {}]   ;;  %s253_s2 = inlined_call_operand.vmem [shape: s32[8,1], index: 2, kind: input, shape index: {}]   ;;  %s254_s3 = inlined_call_operand.vmem [shape: f32[8,128], index: 3, kind: input, shape index: {}]   ;;  %s255_s4 = inlined_call_operand.vmem [shape: f32[8,1], index: 4, kind: output, shape index: {}]  }
   0x1   :  { %s18_s16 = sshll.u32 %s198_s15, 4  ;;  %s174_s19 = scalar_lea.hbm %s252_s1, 128  ;;  %s19_s16 = int_to_ptr.vmem [resolvable:$true] %s18_s16 }
   0x2   :  { %p175_p0 = scmp.ne.s32.totalorder %s252_s1, %s174_s19  ;;  %p178_p1 = scmp.lt.u32.totalorder %s174_s19, %s252_s1 }
   0x4   :  { %p180_p2 = pnand %p178_p1, %p175_p0 }
   0x6   :  { %183 = shalt.err (!%p180_p2)
}
   0x7   :  { %s184_s24 = scalar_lea.vmem %s19_s16, 128  ;;  %p189_p4 = scmp.lt.s32.totalorder %s19_s16, %s19_s16 }
   0x8   :  { %p185_p3 = scmp.ne.s32.totalorder %s19_s16, %s184_s24  ;;  %p190_p5 = scmp.lt.s32.totalorder %s184_s24, %s184_s24 }
   0xa   :  { %p191_p6 = por %p190_p5, %p189_p4 }
   0xc   :  { %p192_p7 = pnand %p191_p6, %p185_p3 }
   0xe   :  { %195 = shalt.err (!%p192_p7)
}
   0xf   :  { %21 = dma.hbm_to_vmem [thread:$0]  %s252_s1, 128, %s19_s16, [#allocation3]  }
  0x10   :  { %196 = dma.done.wait [#allocation3], 128  }
  0x11   :  { %197 = vsyncadd [#allocation3], 4294967168  ;;  %v199_v0 = vmov 0   ;;  %v200_v1 = vmov 0.0   ;;  %v35_v2 = vld [vmem:[%s253_s2] sm:$0xff]  ;;  %vm49_vm0 = vcmask 1043456   ;;  %v36_v10 = vlaneseq }
  0x12   :  { %173 = vset.pattern.permute.xlu0 %v199_v0  ;;  %156 = vmatprep.subr.bf16.mxu1 %v200_v1  ;;  %v30_v3 = vld [vmem:[%s254_s3] sm:$0xff]  ;;  %vm201_vm1 = vmmov 0   ;;  %vm45_vm3 = vcmask 64512   ;;  %vm142_vm4 = vcmask 7168  }
  0x13   :  { %162 = vmatprep.subr.bf16.mxu0 %v200_v1  ;;  %39 = vperm.xlu0 %173, %v35_v2   ;;  %v31_v4 = vpack.c.bf16 %v30_v3, %v30_v3  ;;  %v37_v11 = vand.u32 127, %v36_v10  ;;  %v136_v17 = vld [vmem:[%s251_s0] sm:$0xff] }
  0x14   :  { %158 = vmatprep.mubr.msk.bf16.mxu1 %vm201_vm1, %v200_v1  ;;  %164 = vmatprep.mubr.msk.bf16.mxu0 %vm201_vm1, %v200_v1  ;;  %v138_v23 = vld [vmem:[#allocation2] sm:$0xff] }
  0x15   :  { %v32_v5 = vunpack.c.l.bf16 %v31_v4  ;;  %v94_v6 = vsel %vm49_vm0, %v31_v4, 0 }
  0x16   :  { %163 = vmatpush3.bf16.msra.mxu0 %v94_v6 }
  0x17   :  { %v33_v7 = vsub.f32 %v30_v3, %v32_v5 }
  0x19   :  { %v34_v8 = vpack.c.bf16 %v33_v7, %v33_v7 }
  0x1b   :  { %v51_v9 = vsel %vm49_vm0, %v34_v8, 0 }
  0x1c   :  { %157 = vmatpush3.bf16.msra.mxu1 %v51_v9 }
  0x92   :  { %v40_v12 = vpop.permute.xlu0 %39 }
  0x93   :  { %vm41_vm2 = vcmp.eq.s32.totalorder %v40_v12, %v37_v11 }
  0x94   :  { %v149_v13 = vsel %vm41_vm2, 1.0, %v200_v1 }
  0x95   :  { %v44_v14 = vpack.c.bf16 %v149_v13, %v149_v13 }
  0x97   :  { %159 = vmatmul.mubr.msk.bf16.vlgmr.msra.gmra.mrb[0].mxu1 %vm45_vm3, %v44_v14  ;;  %165 = vmatmul.mubr.msk.bf16.vlgmr.msra.gmra.mrb[0].mxu0 %vm45_vm3, %v44_v14 }
 0x16a   :  { %v87_v15 = vpop.f32.mrb[0].mxu1  ;;  %v130_v16 = vpop.f32.mrb[0].mxu0 }
 0x16b   :  { %v131_v18 = vadd.f32 %v130_v16, %v87_v15  ;;  %v160_v19 = vpop.f32.mrb[1].mxu1  ;;  %v166_v20 = vpop.f32.mrb[1].mxu0 }
 0x16c   :  { %v90_v21 = vpop.f32.mrb[2].mxu1  ;;  %v133_v22 = vpop.f32.mrb[2].mxu0 }
 0x16d   :  { %v137_v24 = vmul.f32 %v136_v17, %v131_v18  ;;  %v161_v25 = vpop.f32.mrb[3].mxu1  ;;  %v167_v26 = vpop.f32.mrb[3].mxu0 }
 0x16f   :  { %v139_v27 = vmul.f32 %v138_v23, %v137_v24 }
 0x171   :  { %140 = vadd.xlane.f32.xlu0 %v139_v27 }
 0x1fe   :  { %v141_v28 = vpop.xlane.xlu0 %140 }
 0x1ff   :  { %143 = vst.msk [vmem:[%s255_s4] sm:$0xff] %vm142_vm4, %v141_v28 }
 0x200   :  { %148 = vsyncpa [#allocation3], 1 }

</bundles_post_ra>
